<compile_context>
chip_gen: v7x
topology: tpu7x:2x2x1
jax: 0.10.0
libtpu: 0.0.40
codegen_flags: <defaults>
</compile_context>

<pallas_src>
import jax
import jax.numpy as jnp
from jax.experimental import pallas as pl
from jax.experimental.pallas import tpu as pltpu

K_IN = 784           # PyTorch input features (28*28)
H = 256              # hidden width
N_OUT = 10           # logits
N_PAD = 128          # lane-dense padded logit width (exactly one MXU column pass)
TB_MAX = 2048        # max batch-tile rows (multiple of 16)


def _round_up(x, m):
    return (x + m - 1) // m * m


def _choose_tile(batch):
    """Pick the batch-tile size (static, shape-derived)."""
    if batch <= 16:
        # Single tiny block; block dims equal to full array dims are legal.
        return batch
    # >= 2 grid steps (so v7x's second TensorCore gets work), rows a multiple
    # of 16 (bf16 sublane packing of the hidden activations).
    half = -(-batch // 2)
    return min(TB_MAX, _round_up(half, 16))


def mlp_kernel(x_ref, w1_ref, b1_ref, w2_ref, b2_ref, o_ref):
    # x_ref:  (tb, 784) f32      w1_ref: (784, 256) bf16   b1_ref: (1, 256) f32
    # w2_ref: (256, 128) bf16    b2_ref: (1, 128)   f32    o_ref:  (tb, 128) f32
    x = x_ref[...].astype(jnp.bfloat16)                    # in-register cast for MXU
    h = jnp.dot(x, w1_ref[...], preferred_element_type=jnp.float32)
    h = jnp.maximum(h + b1_ref[...], 0.0)                  # bias + ReLU in f32
    y = jnp.dot(h.astype(jnp.bfloat16), w2_ref[...],
                preferred_element_type=jnp.float32) + b2_ref[...]
    o_ref[...] = y.astype(o_ref.dtype)                     # full-lane (128-wide) store


def prepare_params(w1, b1, w2, b2):
    """One-time weight prep (hoisted out of the jitted forward):
    PyTorch (out, in) -> (in, out); cast matmul weights to bf16; zero-pad the
    second layer to 128 output columns so the epilogue store is lane-dense.
    Biases stay f32."""
    w1_t = jnp.transpose(w1).astype(jnp.bfloat16)                        # (784, 256)
    w2_t = jnp.zeros((H, N_PAD), jnp.bfloat16).at[:, :N_OUT].set(
        jnp.transpose(w2).astype(jnp.bfloat16))                          # (256, 128)
    b1_2d = b1.reshape(1, H).astype(jnp.float32)                         # (1, 256)
    b2_2d = jnp.zeros((1, N_PAD), jnp.float32).at[0, :N_OUT].set(
        b2.astype(jnp.float32))                                          # (1, 128)
    return w1_t, b1_2d, w2_t, b2_2d


@jax.jit
def mlp_forward(x, params):
    """x: (B, ...) with prod(...) == 784 (e.g. MNIST NCHW (B,1,28,28))."""
    w1_t, b1_2d, w2_t, b2_2d = params

    x2d = x.reshape((-1, K_IN))           # pure reshape: no cast, no pad, no copy
    batch = x2d.shape[0]
    tb = _choose_tile(batch)
    grid = pl.cdiv(batch, tb)             # ragged last block handled by Pallas

    out = pl.pallas_call(
        mlp_kernel,
        out_shape=jax.ShapeDtypeStruct((batch, N_PAD), jnp.float32),
        grid=(grid,),
        in_specs=[
            # X tile streamed/pipelined (last dim == full array dim -> legal).
            # If DMA latency shows in traces, try pipeline_mode=pl.Buffered(3).
            pl.BlockSpec((tb, K_IN), lambda i: (i, 0)),
            pl.BlockSpec((K_IN, H), lambda i: (0, 0)),     # W1^T: VMEM-resident
            pl.BlockSpec((1, H), lambda i: (0, 0)),        # b1:   resident
            pl.BlockSpec((H, N_PAD), lambda i: (0, 0)),    # W2^T (padded): resident
            pl.BlockSpec((1, N_PAD), lambda i: (0, 0)),    # b2 (padded):   resident
        ],
        out_specs=pl.BlockSpec((tb, N_PAD), lambda i: (i, 0)),
        compiler_params=pltpu.CompilerParams(
            dimension_semantics=("parallel",),             # 2 TCs on v7x
            vmem_limit_bytes=32 * 1024 * 1024,             # ~21 MiB live at TB=2048
        ),
    )(x2d, w1_t, b1_2d, w2_t, b2_2d)

    return out[:, :N_OUT]                 # drop the zero-padded logit columns


if __name__ == "__main__":
    key = jax.random.PRNGKey(0)
    k_x, k_w1, k_b1, k_w2, k_b2, k_x2 = jax.random.split(key, 6)

    # Deterministic synthetic parameters (PyTorch nn.Linear shapes).
    w1 = jax.random.normal(k_w1, (256, 784), dtype=jnp.float32) * 0.02
    b1 = jax.random.normal(k_b1, (256,), dtype=jnp.float32) * 0.02
    w2 = jax.random.normal(k_w2, (10, 256), dtype=jnp.float32) * 0.02
    b2 = jax.random.normal(k_b2, (10,), dtype=jnp.float32) * 0.02
    params = prepare_params(w1, b1, w2, b2)

    hp = jax.lax.Precision.HIGHEST

    def reference(x):
        # Same bf16 rounding of X/W as the kernel, exact f32 math otherwise.
        x2d = x.reshape(-1, K_IN)
        xb = x2d.astype(jnp.bfloat16).astype(jnp.float32)
        w1b = w1.astype(jnp.bfloat16).astype(jnp.float32)
        w2b = w2.astype(jnp.bfloat16).astype(jnp.float32)
        h = jnp.maximum(jnp.dot(xb, w1b.T, precision=hp) + b1, 0.0)
        return jnp.dot(h.astype(jnp.bfloat16).astype(jnp.float32), w2b.T,
                       precision=hp) + b2

    # Small MNIST-like input: batch=2, NCHW 1x28x28 == 784 features (grid=1).
    x = jax.random.normal(k_x, (2, 1, 28, 28), dtype=jnp.float32)
    y = jax.block_until_ready(mlp_forward(x, params))
    assert y.shape == (2, 10)
    ref = reference(x)
    assert jnp.allclose(y, ref, atol=2e-3, rtol=2e-3), float(jnp.max(jnp.abs(y - ref)))

    # Ragged multi-tile batch: exercises >= 2 grid steps + masked final block.
    x_big = jax.random.normal(k_x2, (37, 784), dtype=jnp.float32)
    y_big = jax.block_until_ready(mlp_forward(x_big, params))
    assert y_big.shape == (37, 10)
    ref_big = reference(x_big)
    assert jnp.allclose(y_big, ref_big, atol=2e-3, rtol=2e-3), \
        float(jnp.max(jnp.abs(y_big - ref_big)))

    # Loose sanity check vs pure-f32 math (bf16 rounding of X/W dominates).
    x2d = x.reshape(-1, K_IN)
    ref_f32 = jnp.maximum(jnp.dot(x2d, w1.T, precision=hp) + b1, 0.0) @ w2.T + b2
    assert jnp.allclose(y, ref_f32, atol=3e-2, rtol=3e-2)

    print("KERNEL_OK")
</pallas_src>

<mosaic_0001>
module attributes {stable_mosaic.version = 11 : i64} {
  func.func @mlp_kernel(%arg0: i32, %arg1: memref<2x784xf32, #tpu.memory_space<vmem>>, %arg2: memref<784x256xbf16, #tpu.memory_space<vmem>>, %arg3: memref<1x256xf32, #tpu.memory_space<vmem>>, %arg4: memref<256x128xbf16, #tpu.memory_space<vmem>>, %arg5: memref<1x128xf32, #tpu.memory_space<vmem>>, %arg6: memref<2x128xf32, #tpu.memory_space<vmem>>) attributes {dimension_semantics = [#tpu.dimension_semantics<parallel>], iteration_bounds = array<i64: 1>, scalar_prefetch = 0 : i64, scratch_operands = 0 : i64, tpu.core_type = #tpu.core_type<tc>, window_params = [{transform_indices = @transform_0, window_bounds = array<i64: 2, 784>}, {pipeline_mode = #tpu.pipeline_mode<synchronous>, transform_indices = @transform_1, window_bounds = array<i64: 784, 256>}, {pipeline_mode = #tpu.pipeline_mode<synchronous>, transform_indices = @transform_2, window_bounds = array<i64: 1, 256>}, {pipeline_mode = #tpu.pipeline_mode<synchronous>, transform_indices = @transform_3, window_bounds = array<i64: 256, 128>}, {pipeline_mode = #tpu.pipeline_mode<synchronous>, transform_indices = @transform_4, window_bounds = array<i64: 1, 128>}, {transform_indices = @transform_5, window_bounds = array<i64: 2, 128>}]} {
    %c0 = arith.constant 0 : index
    %c0_0 = arith.constant 0 : index
    %0 = vector.load %arg1[%c0, %c0_0] : memref<2x784xf32, #tpu.memory_space<vmem>>, vector<2x784xf32>
    %1 = arith.truncf %0 : vector<2x784xf32> to vector<2x784xbf16>
    %c0_1 = arith.constant 0 : index
    %c0_2 = arith.constant 0 : index
    %2 = vector.load %arg2[%c0_1, %c0_2] : memref<784x256xbf16, #tpu.memory_space<vmem>>, vector<784x256xbf16>
    %cst = arith.constant dense<0.000000e+00> : vector<2x256xf32>
    %3 = tpu.matmul %1, %2, %cst {dimension_numbers = #tpu.dot_dimension_numbers<[1], [0], [0], [1], [0, 0, 1, 1], [], []>} : vector<2x784xbf16>, vector<784x256xbf16>, vector<2x256xf32> -> vector<2x256xf32>
    %c0_3 = arith.constant 0 : index
    %c0_4 = arith.constant 0 : index
    %4 = vector.load %arg3[%c0_3, %c0_4] : memref<1x256xf32, #tpu.memory_space<vmem>>, vector<1x256xf32>
    %5 = vector.broadcast %4 : vector<1x256xf32> to vector<2x256xf32>
    %6 = arith.addf %3, %5 : vector<2x256xf32>
    %cst_5 = arith.constant 0.000000e+00 : f32
    %7 = vector.broadcast %cst_5 : f32 to vector<2x256xf32>
    %8 = arith.maximumf %6, %7 : vector<2x256xf32>
    %9 = arith.truncf %8 : vector<2x256xf32> to vector<2x256xbf16>
    %c0_6 = arith.constant 0 : index
    %c0_7 = arith.constant 0 : index
    %10 = vector.load %arg4[%c0_6, %c0_7] : memref<256x128xbf16, #tpu.memory_space<vmem>>, vector<256x128xbf16>
    %cst_8 = arith.constant dense<0.000000e+00> : vector<2x128xf32>
    %11 = tpu.matmul %9, %10, %cst_8 {dimension_numbers = #tpu.dot_dimension_numbers<[1], [0], [0], [1], [0, 0, 1, 1], [], []>} : vector<2x256xbf16>, vector<256x128xbf16>, vector<2x128xf32> -> vector<2x128xf32>
    %c0_9 = arith.constant 0 : index
    %c0_10 = arith.constant 0 : index
    %12 = vector.load %arg5[%c0_9, %c0_10] : memref<1x128xf32, #tpu.memory_space<vmem>>, vector<1x128xf32>
    %13 = vector.broadcast %12 : vector<1x128xf32> to vector<2x128xf32>
    %14 = arith.addf %11, %13 : vector<2x128xf32>
    %c0_11 = arith.constant 0 : index
    %c0_12 = arith.constant 0 : index
    %15 = vector.load %arg6[%c0_11, %c0_12] : memref<2x128xf32, #tpu.memory_space<vmem>>, vector<2x128xf32>
    tpu.vector_store %arg6[%c0_11, %c0_12], %14 {strides = array<i32>} : memref<2x128xf32, #tpu.memory_space<vmem>>, vector<2x128xf32>,
    return
  }
  func.func @transform_0(%arg0: i32) -> (i32, i32) {
    %c0_i32 = arith.constant 0 : i32
    %c0_i32_0 = arith.constant 0 : i32
    return %arg0, %c0_i32 : i32, i32
  }
  func.func @transform_1(%arg0: i32) -> (i32, i32) {
    %c0_i32 = arith.constant 0 : i32
    %c0_i32_0 = arith.constant 0 : i32
    %c0_i32_1 = arith.constant 0 : i32
    return %c0_i32, %c0_i32_0 : i32, i32
  }
  func.func @transform_2(%arg0: i32) -> (i32, i32) {
    %c0_i32 = arith.constant 0 : i32
    %c0_i32_0 = arith.constant 0 : i32
    %c0_i32_1 = arith.constant 0 : i32
    return %c0_i32, %c0_i32_0 : i32, i32
  }
  func.func @transform_3(%arg0: i32) -> (i32, i32) {
    %c0_i32 = arith.constant 0 : i32
    %c0_i32_0 = arith.constant 0 : i32
    %c0_i32_1 = arith.constant 0 : i32
    return %c0_i32, %c0_i32_0 : i32, i32
  }
  func.func @transform_4(%arg0: i32) -> (i32, i32) {
    %c0_i32 = arith.constant 0 : i32
    %c0_i32_0 = arith.constant 0 : i32
    %c0_i32_1 = arith.constant 0 : i32
    return %c0_i32, %c0_i32_0 : i32, i32
  }
  func.func @transform_5(%arg0: i32) -> (i32, i32) {
    %c0_i32 = arith.constant 0 : i32
    %c0_i32_0 = arith.constant 0 : i32
    return %arg0, %c0_i32 : i32, i32
  }
}

</mosaic_0001>

<bundles_post_ra>
// kernel: mlp_forward.1
= control target key start
LH: loop header
LB: loop body
LE: loop exit
PB: predicated region body
PF: predicated region fallthrough
CT: control target
= control target key end

     0   :  { %10 = vsyncpa [#allocation3], 0  ;;  %s1566_s0 = inlined_call_operand.vmem [shape: f32[2,784], index: 0, kind: input, shape index: {}]   ;;  %s1567_s1 = inlined_call_operand.hbm [shape: bf16[784,256], index: 1, kind: input, shape index: {}]   ;;  %s1568_s2 = inlined_call_operand.vmem [shape: f32[1,256], index: 2, kind: input, shape index: {}]   ;;  %s1569_s3 = inlined_call_operand.vmem [shape: bf16[256,128], index: 3, kind: input, shape index: {}]   ;;  %s1570_s4 = inlined_call_operand.vmem [shape: f32[1,128], index: 4, kind: input, shape index: {}]   ;;  %s1571_s5 = inlined_call_operand.hbm [shape: f32[2,128], index: 5, kind: output, shape index: {}]  }
   0x1   :  { %11 = vsyncpa [#allocation4], 0  ;;  %s1417_s18 = smov [#allocation2]   ;;  %s1369_s22 = scalar_lea.hbm %s1567_s1, 12544 }
   0x2   :  { %s19_s19 = sshll.u32 %s1417_s18, 4  ;;  %p1370_p0 = scmp.ne.s32.totalorder %s1567_s1, %s1369_s22  ;;  %s20_s19 = int_to_ptr.vmem [resolvable:$true] %s19_s19 }
   0x3   :  { %p1373_p1 = scmp.lt.u32.totalorder %s1369_s22, %s1567_s1 }
   0x5   :  { %p1375_p2 = pnand %p1373_p1, %p1370_p0 }
   0x7   :  { %1378 = shalt.err (!%p1375_p2)
}
   0x8   :  { %s1379_s27 = scalar_lea.vmem %s20_s19, 12544  ;;  %p1384_p4 = scmp.lt.s32.totalorder %s20_s19, %s20_s19 }
   0x9   :  { %p1380_p3 = scmp.ne.s32.totalorder %s20_s19, %s1379_s27  ;;  %p1385_p5 = scmp.lt.s32.totalorder %s1379_s27, %s1379_s27 }
   0xb   :  { %p1386_p6 = por %p1385_p5, %p1384_p4 }
   0xd   :  { %p1387_p7 = pnand %p1386_p6, %p1380_p3 }
   0xf   :  { %1390 = shalt.err (!%p1387_p7)
}
  0x10   :  { %s1418_s28 = smov 128   ;;  %s1419_s29 = smov 8  }
  0x11   :  { %25 = dma.hbm_to_vmem [thread:$0]  %s1567_s1, 12544, %s20_s19, [#allocation3], %s1418_s28, %s1418_s28, %s1419_s29  }
  0x12   :  { %1413 = dma.done.wait [#allocation3], 12544  }
  0x13   :  { %1414 = vsyncadd [#allocation3], 4294954752  ;;  %v1204_v0 = vld [vmem:[#allocation2 + $0x104] ss:$8 sps:$4 sm:$0xff]   ;;  %v1206_v1 = vld [vmem:[#allocation2 + $0x100] ss:$8 sps:$4 sm:$0xff]   ;;  %v44_v13 = vlaneseq }
  0x14   :  { %732 = vmatprep.subr.bf16.mxu0 %v1204_v0  ;;  %v1207_v2 = vld [vmem:[#allocation2 + $0x114] ss:$8 sps:$4 sm:$0xff]   ;;  %v1209_v3 = vld [vmem:[#allocation2 + $0x110] ss:$8 sps:$4 sm:$0xff]   ;;  %v1210_v4 = vld [vmem:[#allocation2 + $0x124] ss:$8 sps:$4 sm:$0xff]  }
  0x15   :  { %733 = vmatpush1.bf16.msra.mxu0 %v1206_v1  ;;  %v1212_v5 = vld [vmem:[#allocation2 + $0x120] ss:$8 sps:$4 sm:$0xff]   ;;  %v1213_v6 = vld [vmem:[#allocation2 + $0x134] ss:$8 sps:$4 sm:$0xff]   ;;  %v1215_v7 = vld [vmem:[#allocation2 + $0x130] ss:$8 sps:$4 sm:$0xff]  }
  0x16   :  { %734 = vmatprep.subr.bf16.mxu0 %v1207_v2  ;;  %v1216_v8 = vld [vmem:[#allocation2 + $0x144] ss:$8 sps:$4 sm:$0xff]   ;;  %v1218_v9 = vld [vmem:[#allocation2 + $0x140] ss:$8 sps:$4 sm:$0xff]   ;;  %v1219_v10 = vld [vmem:[#allocation2 + $0x154] ss:$8 sps:$4 sm:$0xff]  }
  0x17   :  { %v1420_v11 = vmov 1983009808   ;;  %v1221_v14 = vld [vmem:[#allocation2 + $0x150] ss:$8 sps:$4 sm:$0xff]   ;;  %v1246_v15 = vld [vmem:[#allocation2 + $0x4] ss:$8 sps:$4 sm:$0xff]  }
  0x18   :  { %v42_v12 = vunpack.c.l.s4 %v1420_v11  ;;  %v1248_v16 = vld [vmem:[#allocation2] ss:$8 sps:$4 sm:$0xff]   ;;  %v1222_v17 = vld [vmem:[#allocation2 + $0x164] ss:$8 sps:$4 sm:$0xff]   ;;  %v1465_v19 = vshrl.u32 %v44_v13, 7  ;;  %691 = vmatprep.subr.bf16.mxu1 %v1246_v15  ;;  %v36_v26 = vld [vmem:[%s1566_s0] sm:$0xff] }
  0x19   :  { %735 = vmatpush1.bf16.msra.mxu0 %v1209_v3  ;;  %692 = vmatpush1.bf16.msra.mxu1 %v1248_v16  ;;  %v1252_v20 = vld [vmem:[#allocation2 + $0x14] ss:$8 sps:$4 sm:$0xff]   ;;  %v1254_v21 = vld [vmem:[#allocation2 + $0x10] ss:$8 sps:$4 sm:$0xff]   ;;  %v1224_v22 = vld [vmem:[#allocation2 + $0x160] ss:$8 sps:$4 sm:$0xff]   ;;  %v40_v29 = vcombine.high %v36_v26, %v36_v26 }
  0x1a   :  { %736 = vmatprep.subr.bf16.mxu0 %v1210_v4  ;;  %v43_v18 = vunpack.c.0.s8 %v42_v12  ;;  %v1225_v23 = vld [vmem:[#allocation2 + $0x174] ss:$8 sps:$4 sm:$0xff]   ;;  %693 = vmatprep.subr.bf16.mxu1 %v1252_v20  ;;  %v1258_v24 = vld [vmem:[#allocation2 + $0x24] ss:$8 sps:$4 sm:$0xff]   ;;  %v1227_v27 = vld [vmem:[#allocation2 + $0x170] ss:$8 sps:$4 sm:$0xff]  }
  0x1b   :  { %v1260_v28 = vld [vmem:[#allocation2 + $0x20] ss:$8 sps:$4 sm:$0xff]   ;;  %v1265_v31 = vld [vmem:[#allocation2 + $0x34] ss:$8 sps:$4 sm:$0xff]   ;;  %v1228_v32 = vld [vmem:[#allocation2 + $0x184] ss:$8 sps:$4 sm:$0xff]  }
  0x1c   :  { %v1468_v25 = vsub.s32 %v43_v18, %v1465_v19  ;;  %v1230_v35 = vld [vmem:[#allocation2 + $0x180] ss:$8 sps:$4 sm:$0xff]   ;;  %v1267_v37 = vld [vmem:[#allocation2 + $0x30] ss:$8 sps:$4 sm:$0xff]   ;;  %v1271_v39 = vld [vmem:[#allocation2 + $0x44] ss:$8 sps:$4 sm:$0xff]  }
  0x1d   :  { %737 = vmatpush1.bf16.msra.mxu0 %v1212_v5  ;;  %694 = vmatpush1.bf16.msra.mxu1 %v1254_v21  ;;  %v1231_v40 = vld [vmem:[#allocation2 + $0x194] ss:$8 sps:$4 sm:$0xff]   ;;  %v1233_v42 = vld [vmem:[#allocation2 + $0x190] ss:$8 sps:$4 sm:$0xff]   ;;  %v1273_v43 = vld [vmem:[#allocation2 + $0x40] ss:$8 sps:$4 sm:$0xff]  }
  0x1e   :  { %738 = vmatprep.subr.bf16.mxu0 %v1213_v6  ;;  %v1474_v30 = vrot.slane %v36_v26, %v1468_v25  ;;  %695 = vmatprep.subr.bf16.mxu1 %v1258_v24  ;;  %v1477_v33 = vrot.slane %v40_v29, %v1468_v25  ;;  %v1277_v44 = vld [vmem:[#allocation2 + $0x54] ss:$8 sps:$4 sm:$0xff]   ;;  %v1234_v45 = vld [vmem:[#allocation2 + $0x1a4] ss:$8 sps:$4 sm:$0xff]   ;;  %v1236_v46 = vld [vmem:[#allocation2 + $0x1a0] ss:$8 sps:$4 sm:$0xff]  }
  0x1f   :  { %v1279_v47 = vld [vmem:[#allocation2 + $0x50] ss:$8 sps:$4 sm:$0xff]   ;;  %v1283_v48 = vld [vmem:[#allocation2 + $0x64] ss:$8 sps:$4 sm:$0xff]   ;;  %v1237_v49 = vld [vmem:[#allocation2 + $0x1b4] ss:$8 sps:$4 sm:$0xff]  }
  0x20   :  { %v55_v34 = vcombine.high %v1474_v30, %v1474_v30  ;;  %v56_v36 = vcombine.high %v1477_v33, %v1477_v33  ;;  %v1239_v50 = vld [vmem:[#allocation2 + $0x1b0] ss:$8 sps:$4 sm:$0xff]   ;;  %v1285_v51 = vld [vmem:[#allocation2 + $0x60] ss:$8 sps:$4 sm:$0xff]   ;;  %v1289_v52 = vld [vmem:[#allocation2 + $0x74] ss:$8 sps:$4 sm:$0xff]  }
  0x21   :  { %739 = vmatpush1.bf16.msra.mxu0 %v1215_v7  ;;  %696 = vmatpush1.bf16.msra.mxu1 %v1260_v28  ;;  %v1240_v53 = vld [vmem:[#allocation2 + $0x1c4] ss:$8 sps:$4 sm:$0xff]   ;;  %v1242_v54 = vld [vmem:[#allocation2 + $0x1c0] ss:$8 sps:$4 sm:$0xff]   ;;  %v1291_v55 = vld [vmem:[#allocation2 + $0x70] ss:$8 sps:$4 sm:$0xff]   ;;  %v82_v7 = vpack.c.bf16 %v1477_v33, %v1477_v33 }
  0x22   :  { %740 = vmatprep.subr.bf16.mxu0 %v1216_v8  ;;  %v81_v38 = vpack.c.bf16 %v55_v34, %v55_v34  ;;  %697 = vmatprep.subr.bf16.mxu1 %v1265_v31  ;;  %v83_v41 = vpack.c.bf16 %v56_v36, %v56_v36  ;;  %v1295_v56 = vld [vmem:[#allocation2 + $0x84] ss:$8 sps:$4 sm:$0xff]   ;;  %v1243_v57 = vld [vmem:[#allocation2 + $0x1d4] ss:$8 sps:$4 sm:$0xff]   ;;  %v1245_v58 = vld [vmem:[#allocation2 + $0x1d0] ss:$8 sps:$4 sm:$0xff]   ;;  %v80_v34 = vpack.c.bf16 %v1474_v30, %v1474_v30 }
  0x23   :  { %v1297_v59 = vld [vmem:[#allocation2 + $0x80] ss:$8 sps:$4 sm:$0xff]   ;;  %v1301_v60 = vld [vmem:[#allocation2 + $0x94] ss:$8 sps:$4 sm:$0xff]   ;;  %v1249_v61 = vld [vmem:[#allocation2 + $0x1e4] ss:$8 sps:$4 sm:$0xff]  }
  0x24   :  { %723 = vmatprep.mubr.bf16.mxu1 %v81_v38  ;;  %764 = vmatprep.mubr.bf16.mxu0 %v83_v41  ;;  %v1251_v62 = vld [vmem:[#allocation2 + $0x1e0] ss:$8 sps:$4 sm:$0xff]   ;;  %v1303_v63 = vld [vmem:[#allocation2 + $0x90] ss:$8 sps:$4 sm:$0xff]   ;;  %v1307_v0 = vld [vmem:[#allocation2 + $0xa4] ss:$8 sps:$4 sm:$0xff]  }
  0x25   :  { %741 = vmatpush1.bf16.msra.mxu0 %v1218_v9  ;;  %698 = vmatpush1.bf16.msra.mxu1 %v1267_v37  ;;  %v1255_v1 = vld [vmem:[#allocation2 + $0x1f4] ss:$8 sps:$4 sm:$0xff]   ;;  %v1257_v2 = vld [vmem:[#allocation2 + $0x1f0] ss:$8 sps:$4 sm:$0xff]   ;;  %v1309_v3 = vld [vmem:[#allocation2 + $0xa0] ss:$8 sps:$4 sm:$0xff]  }
  0x26   :  { %742 = vmatprep.subr.bf16.mxu0 %v1219_v10  ;;  %699 = vmatprep.subr.bf16.mxu1 %v1271_v39  ;;  %v1313_v4 = vld [vmem:[#allocation2 + $0xb4] ss:$8 sps:$4 sm:$0xff]   ;;  %v1264_v5 = vld [vmem:[#allocation2 + $0x204] ss:$8 sps:$4 sm:$0xff]   ;;  %v1262_v6 = vld [vmem:[#allocation2 + $0x200] ss:$8 sps:$4 sm:$0xff]  }
  0x27   :  { %v1315_v8 = vld [vmem:[#allocation2 + $0xb0] ss:$8 sps:$4 sm:$0xff]   ;;  %v1319_v9 = vld [vmem:[#allocation2 + $0xc4] ss:$8 sps:$4 sm:$0xff]   ;;  %v1270_v10 = vld [vmem:[#allocation2 + $0x214] ss:$8 sps:$4 sm:$0xff]  }
  0x28   :  { %v1268_v11 = vld [vmem:[#allocation2 + $0x210] ss:$8 sps:$4 sm:$0xff]   ;;  %v1321_v13 = vld [vmem:[#allocation2 + $0xc0] ss:$8 sps:$4 sm:$0xff]   ;;  %v1325_v15 = vld [vmem:[#allocation2 + $0xd4] ss:$8 sps:$4 sm:$0xff]  }
  0x29   :  { %743 = vmatpush1.bf16.msra.mxu0 %v1221_v14  ;;  %700 = vmatpush1.bf16.msra.mxu1 %v1273_v43  ;;  %v37_v12 = vld [vmem:[%s1566_s0 + $0x8] sm:$0x3f]  ;;  %v1276_v16 = vld [vmem:[#allocation2 + $0x224] ss:$8 sps:$4 sm:$0xff]   ;;  %v1274_v18 = vld [vmem:[#allocation2 + $0x220] ss:$8 sps:$4 sm:$0xff]  }
  0x2a   :  { %744 = vmatprep.subr.bf16.mxu0 %v1222_v17  ;;  %701 = vmatprep.subr.bf16.mxu1 %v1277_v44  ;;  %v1489_v14 = vrot.slane %v37_v12, %v1468_v25  ;;  %v1282_v20 = vld [vmem:[#allocation2 + $0x234] ss:$8 sps:$4 sm:$0xff]   ;;  %v1327_v21 = vld [vmem:[#allocation2 + $0xd0] ss:$8 sps:$4 sm:$0xff]   ;;  %v1333_v24 = vld [vmem:[#allocation2 + $0xe0] ss:$8 sps:$4 sm:$0xff]  }
  0x2b   :  { %v1280_v26 = vld [vmem:[#allocation2 + $0x230] ss:$8 sps:$4 sm:$0xff]   ;;  %v1288_v28 = vld [vmem:[#allocation2 + $0x244] ss:$8 sps:$4 sm:$0xff]   ;;  %v1286_v31 = vld [vmem:[#allocation2 + $0x240] ss:$8 sps:$4 sm:$0xff]  }
  0x2c   :  { %v72_v17 = vcombine.high %v1489_v14, %v1489_v14  ;;  %v1339_v29 = vld [vmem:[#allocation2 + $0xf0] ss:$8 sps:$4 sm:$0xff]   ;;  %v1294_v33 = vld [vmem:[#allocation2 + $0x254] ss:$8 sps:$4 sm:$0xff]   ;;  %v1346_v36 = vld [vmem:[#allocation2 + $0x300] ss:$8 sps:$4 sm:$0xff]  }
  0x2d   :  { %745 = vmatpush1.bf16.msra.mxu0 %v1224_v22  ;;  %702 = vmatpush1.bf16.msra.mxu1 %v1279_v47  ;;  %v1292_v37 = vld [vmem:[#allocation2 + $0x250] ss:$8 sps:$4 sm:$0xff]   ;;  %v1300_v39 = vld [vmem:[#allocation2 + $0x264] ss:$8 sps:$4 sm:$0xff]   ;;  %v1421_v41 = vmov 0   ;;  %vm687_vm0 = vcmask 130048  }
  0x2e   :  { %746 = vmatprep.subr.bf16.mxu0 %v1225_v23  ;;  %703 = vmatprep.subr.bf16.mxu1 %v1283_v48  ;;  %v85_v22 = vpack.c.bf16 %v72_v17, %v72_v17  ;;  %v1331_v23 = vld [vmem:[#allocation2 + $0xe4] ss:$8 sps:$4 sm:$0xff]   ;;  %v1353_v38 = vld [vmem:[%s1569_s3 + $0x40] sm:$0xff]   ;;  %v1298_v30 = vld [vmem:[#allocation2 + $0x260] ss:$8 sps:$4 sm:$0xff]   ;;  %s1422_s16 = smov [#allocation5]  }
  0x2f   :  { %v1354_v44 = vld [vmem:[%s1569_s3] sm:$0xff]   ;;  %v1356_v47 = vld [vmem:[%s1569_s3 + $0x8] sm:$0xff]   ;;  %v1310_v48 = vld [vmem:[#allocation2 + $0x280] ss:$8 sps:$4 sm:$0xff]   ;;  %s1041_s17 = sshll.u32 %s1422_s16, 4  ;;  %s1042_s17 = int_to_ptr.vmem [resolvable:$true] %s1041_s17 }
  0x30   :  { %s1391_s18 = scalar_lea.vmem %s1042_s17, 32  ;;  %p1396_p9 = scmp.lt.s32.totalorder %s1042_s17, %s1042_s17 }
  0x31   :  { %747 = vmatpush1.bf16.msra.mxu0 %v1227_v27  ;;  %704 = vmatpush1.bf16.msra.mxu1 %v1285_v51  ;;  %v1337_v27 = vld [vmem:[#allocation2 + $0xf4] ss:$8 sps:$4 sm:$0xff]   ;;  %v1358_v51 = vld [vmem:[%s1569_s3 + $0x10] sm:$0xff]   ;;  %p1392_p8 = scmp.ne.s32.totalorder %s1042_s17, %s1391_s18  ;;  %p1397_p10 = scmp.lt.s32.totalorder %s1391_s18, %s1391_s18 }
  0x32   :  { %748 = vmatprep.subr.bf16.mxu0 %v1228_v32  ;;  %705 = vmatprep.subr.bf16.mxu1 %v1289_v52  ;;  %v1348_v32 = vld [vmem:[#allocation2 + $0x304] ss:$8 sps:$4 sm:$0xff]   ;;  %v1316_v52 = vld [vmem:[#allocation2 + $0x290] ss:$8 sps:$4 sm:$0xff]  }
  0x33   :  { %p1398_p11 = por %p1397_p10, %p1396_p9 }
  0x35   :  { %749 = vmatpush1.bf16.msra.mxu0 %v1230_v35  ;;  %706 = vmatpush1.bf16.msra.mxu1 %v1291_v55  ;;  %v57_v35 = vcombine.high %v37_v12, %v37_v12  ;;  %v1330_v55 = vld [vmem:[#allocation2 + $0x2b4] ss:$8 sps:$4 sm:$0xff]   ;;  %p1399_p12 = pnand %p1398_p11, %p1392_p8 }
  0x36   :  { %750 = vmatprep.subr.bf16.mxu0 %v1231_v40  ;;  %707 = vmatprep.subr.bf16.mxu1 %v1295_v56  ;;  %v1328_v56 = vld [vmem:[#allocation2 + $0x2b0] ss:$8 sps:$4 sm:$0xff]  }
  0x37   :  { %v71_v40 = vrot.slane %v57_v35, %v1468_v25  ;;  %v1355_v25 = vld [vmem:[%s1569_s3 + $0x48] sm:$0xff]  }
  0x39   :  { %751 = vmatpush1.bf16.msra.mxu0 %v1233_v42  ;;  %708 = vmatpush1.bf16.msra.mxu1 %v1297_v59  ;;  %v1306_v42 = vld [vmem:[#allocation2 + $0x274] ss:$8 sps:$4 sm:$0xff]   ;;  %v86_v43 = vpack.c.bf16 %v71_v40, %v71_v40 }
  0x3a   :  { %752 = vmatprep.subr.bf16.mxu0 %v1234_v45  ;;  %709 = vmatprep.subr.bf16.mxu1 %v1301_v60  ;;  %v1304_v45 = vld [vmem:[#allocation2 + $0x270] ss:$8 sps:$4 sm:$0xff]   ;;  %v1342_v59 = vld [vmem:[#allocation2 + $0x2d4] ss:$8 sps:$4 sm:$0xff]  }
  0x3b   :  { %v1340_v60 = vld [vmem:[#allocation2 + $0x2d0] ss:$8 sps:$4 sm:$0xff]  }
  0x3d   :  { %753 = vmatpush1.bf16.msra.mxu0 %v1236_v46  ;;  %710 = vmatpush1.bf16.msra.mxu1 %v1303_v63  ;;  %v1312_v46 = vld [vmem:[#allocation2 + $0x284] ss:$8 sps:$4 sm:$0xff]   ;;  %v1351_v63 = vld [vmem:[#allocation2 + $0x2f4] ss:$8 sps:$4 sm:$0xff]  }
  0x3e   :  { %754 = vmatprep.subr.bf16.mxu0 %v1237_v49  ;;  %711 = vmatprep.subr.bf16.mxu1 %v1307_v0  ;;  %v1357_v49 = vld [vmem:[%s1569_s3 + $0x50] sm:$0xff]   ;;  %v1349_v0 = vld [vmem:[#allocation2 + $0x2f0] ss:$8 sps:$4 sm:$0xff]  }
  0x41   :  { %755 = vmatpush1.bf16.msra.mxu0 %v1239_v50  ;;  %712 = vmatpush1.bf16.msra.mxu1 %v1309_v3  ;;  %v1318_v50 = vld [vmem:[#allocation2 + $0x294] ss:$8 sps:$4 sm:$0xff]   ;;  %v1360_v3 = vld [vmem:[%s1569_s3 + $0x18] sm:$0xff]  }
  0x42   :  { %756 = vmatprep.subr.bf16.mxu0 %v1240_v53  ;;  %713 = vmatprep.subr.bf16.mxu1 %v1313_v4  ;;  %v1324_v53 = vld [vmem:[#allocation2 + $0x2a4] ss:$8 sps:$4 sm:$0xff]   ;;  %v1361_v4 = vld [vmem:[%s1569_s3 + $0x60] sm:$0xff]  }
  0x45   :  { %757 = vmatpush1.bf16.msra.mxu0 %v1242_v54  ;;  %714 = vmatpush1.bf16.msra.mxu1 %v1315_v8  ;;  %v1322_v54 = vld [vmem:[#allocation2 + $0x2a0] ss:$8 sps:$4 sm:$0xff]  }
  0x46   :  { %758 = vmatprep.subr.bf16.mxu0 %v1243_v57  ;;  %715 = vmatprep.subr.bf16.mxu1 %v1319_v9  ;;  %v1336_v57 = vld [vmem:[#allocation2 + $0x2c4] ss:$8 sps:$4 sm:$0xff]  }
  0x47   :  { %v1365_v8 = vld [vmem:[%s1569_s3 + $0x70] sm:$0xff]  }
  0x48   :  { %v1366_v9 = vld [vmem:[%s1569_s3 + $0x30] sm:$0xff]  }
  0x49   :  { %759 = vmatpush1.bf16.msra.mxu0 %v1245_v58  ;;  %716 = vmatpush1.bf16.msra.mxu1 %v1321_v13  ;;  %v1334_v58 = vld [vmem:[#allocation2 + $0x2c0] ss:$8 sps:$4 sm:$0xff]  }
  0x4a   :  { %760 = vmatprep.subr.bf16.mxu0 %v1249_v61  ;;  %717 = vmatprep.subr.bf16.mxu1 %v1325_v15  ;;  %v1345_v61 = vld [vmem:[#allocation2 + $0x2e4] ss:$8 sps:$4 sm:$0xff]  }
  0x4d   :  { %761 = vmatpush1.bf16.msra.mxu0 %v1251_v62  ;;  %718 = vmatpush1.bf16.msra.mxu1 %v1327_v21  ;;  %v1343_v62 = vld [vmem:[#allocation2 + $0x2e0] ss:$8 sps:$4 sm:$0xff]   ;;  %v189_v21 = vsub.s32 0, %v1465_v19 }
  0x4e   :  { %762 = vmatprep.subr.bf16.mxu0 %v1255_v1  ;;  %719 = vmatprep.subr.bf16.mxu1 %v1331_v23  ;;  %v84_v1 = vpack.c.bf16 %v1489_v14, %v1489_v14  ;;  %v193_v23 = vsub.s32 1, %v1465_v19  ;;  %v1149_v19 = vld [vmem:[%s1570_s4] ss:$0 sm:$0xff] }
  0x51   :  { %763 = vmatpush1.bf16.msra.mxu0 %v1257_v2  ;;  %720 = vmatpush1.bf16.msra.mxu1 %v1333_v24  ;;  %v1359_v2 = vld [vmem:[%s1569_s3 + $0x58] sm:$0xff]  }
  0x52   :  { %773 = vmatprep.subr.bf16.mxu0 %v1264_v5  ;;  %721 = vmatprep.subr.bf16.mxu1 %v1337_v27  ;;  %v1362_v5 = vld [vmem:[%s1569_s3 + $0x20] sm:$0xff]  }
  0x54   :  { %765 = vmatmul.mubr.bf16.vlgmr.msra.gmra.mrb[0].mxu0 %v82_v7  ;;  %v1364_v7 = vld [vmem:[%s1569_s3 + $0x28] sm:$0xff]  }
  0x55   :  { %774 = vmatpush1.bf16.msra.mxu0 %v1262_v6  ;;  %805 = vmatprep.mubr.bf16.mxu0 %v85_v22  ;;  %v1363_v6 = vld [vmem:[%s1569_s3 + $0x68] sm:$0xff]   ;;  %v185_v22 = vld [vmem:[%s1568_s2] sm:$0x3] }
  0x56   :  { %775 = vmatprep.subr.bf16.mxu0 %v1270_v10  ;;  %722 = vmatpush1.bf16.msra.mxu1 %v1339_v29  ;;  %v1367_v10 = vld [vmem:[%s1569_s3 + $0x78] sm:$0xff]   ;;  %v190_v24 = vrot.slane %v185_v22, %v189_v21 }
  0x57   :  { %814 = vmatprep.subr.bf16.mxu1 %v1348_v32 }
  0x59   :  { %776 = vmatpush1.bf16.msra.mxu0 %v1268_v11  ;;  %724 = vmatmul.mubr.bf16.vlgmr.msra.gmra.mrb[0].mxu1 %v80_v34  ;;  %v1368_v11 = vld [vmem:[%s1569_s3 + $0x38] sm:$0xff]  }
  0x5a   :  { %777 = vmatprep.subr.bf16.mxu0 %v1276_v16  ;;  %815 = vmatpush1.bf16.msra.mxu1 %v1346_v36 }
  0x5b   :  { %846 = vmatprep.mubr.bf16.mxu1 %v1421_v41  ;;  %1166 = vmatprep.subr.bf16.mxu1 %v1353_v38 }
  0x5d   :  { %778 = vmatpush1.bf16.msra.mxu0 %v1274_v18 }
  0x5e   :  { %779 = vmatprep.subr.bf16.mxu0 %v1282_v20 }
  0x61   :  { %780 = vmatpush1.bf16.msra.mxu0 %v1280_v26  ;;  %1148 = vmatmul.mubr.msk.bf16.vlgmr.msra.gmra.mrb[4].mxu1 %vm687_vm0, %v86_v43  ;;  %v194_v26 = vrot.slane %v185_v22, %v193_v23 }
  0x62   :  { %781 = vmatprep.subr.bf16.mxu0 %v1288_v28  ;;  %1167 = vmatpush3.bf16.msra.mxu1 %v1354_v44 }
  0x63   :  { %1168 = vmatprep.subr.bf16.mxu1 %v1355_v25 }
  0x65   :  { %782 = vmatpush1.bf16.msra.mxu0 %v1286_v31 }
  0x66   :  { %783 = vmatprep.subr.bf16.mxu0 %v1294_v33  ;;  %1169 = vmatpush3.bf16.msra.mxu1 %v1356_v47 }
  0x67   :  { %1170 = vmatprep.subr.bf16.mxu1 %v1357_v49 }
  0x69   :  { %784 = vmatpush1.bf16.msra.mxu0 %v1292_v37 }
  0x6a   :  { %785 = vmatprep.subr.bf16.mxu0 %v1300_v39  ;;  %1171 = vmatpush3.bf16.msra.mxu1 %v1358_v51 }
  0x6b   :  { %1172 = vmatprep.subr.bf16.mxu1 %v1359_v2 }
  0x6d   :  { %786 = vmatpush1.bf16.msra.mxu0 %v1298_v30 }
  0x6e   :  { %787 = vmatprep.subr.bf16.mxu0 %v1306_v42  ;;  %1173 = vmatpush3.bf16.msra.mxu1 %v1360_v3 }
  0x6f   :  { %1174 = vmatprep.subr.bf16.mxu1 %v1361_v4 }
  0x71   :  { %788 = vmatpush1.bf16.msra.mxu0 %v1304_v45 }
  0x72   :  { %789 = vmatprep.subr.bf16.mxu0 %v1312_v46  ;;  %1175 = vmatpush3.bf16.msra.mxu1 %v1362_v5 }
  0x73   :  { %1176 = vmatprep.subr.bf16.mxu1 %v1363_v6 }
  0x75   :  { %790 = vmatpush1.bf16.msra.mxu0 %v1310_v48 }
  0x76   :  { %791 = vmatprep.subr.bf16.mxu0 %v1318_v50  ;;  %1177 = vmatpush3.bf16.msra.mxu1 %v1364_v7 }
  0x77   :  { %1178 = vmatprep.subr.bf16.mxu1 %v1365_v8 }
  0x79   :  { %792 = vmatpush1.bf16.msra.mxu0 %v1316_v52 }
  0x7a   :  { %793 = vmatprep.subr.bf16.mxu0 %v1324_v53  ;;  %1179 = vmatpush3.bf16.msra.mxu1 %v1366_v9 }
  0x7b   :  { %1180 = vmatprep.subr.bf16.mxu1 %v1367_v10 }
  0x7d   :  { %794 = vmatpush1.bf16.msra.mxu0 %v1322_v54 }
  0x7e   :  { %795 = vmatprep.subr.bf16.mxu0 %v1330_v55  ;;  %1181 = vmatpush3.bf16.msra.mxu1 %v1368_v11 }
  0x81   :  { %796 = vmatpush1.bf16.msra.mxu0 %v1328_v56 }
  0x82   :  { %797 = vmatprep.subr.bf16.mxu0 %v1336_v57 }
  0x85   :  { %798 = vmatpush1.bf16.msra.mxu0 %v1334_v58 }
  0x86   :  { %799 = vmatprep.subr.bf16.mxu0 %v1342_v59 }
  0x89   :  { %800 = vmatpush1.bf16.msra.mxu0 %v1340_v60 }
  0x8a   :  { %801 = vmatprep.subr.bf16.mxu0 %v1345_v61 }
  0x8d   :  { %802 = vmatpush1.bf16.msra.mxu0 %v1343_v62 }
  0x8e   :  { %803 = vmatprep.subr.bf16.mxu0 %v1351_v63 }
  0x91   :  { %804 = vmatpush1.bf16.msra.mxu0 %v1349_v0 }
  0x94   :  { %806 = vmatmul.mubr.bf16.vlgmr.msra.gmra.mrb[0].mxu0 %v84_v1 }
 0x12c   :  { %v725_v12 = vpop.f32.mrb[0].mxu1 }
 0x12d   :  { %v727_v13 = vpop.f32.mrb[1].mxu1  ;;  %v726_v27 = vadd.f32 %v725_v12, %v190_v24 }
 0x12e   :  { %v729_v14 = vpop.f32.mrb[2].mxu1  ;;  %v728_v28 = vadd.f32 %v727_v13, %v194_v26 }
 0x12f   :  { %v730_v15 = vpop.f32.mrb[3].mxu1 }
 0x134   :  { %v848_v16 = vpop.f32.mrb[4].mxu1 }
 0x135   :  { %v850_v17 = vpop.f32.mrb[5].mxu1 }
 0x136   :  { %v852_v18 = vpop.f32.mrb[6].mxu1 }
 0x137   :  { %v853_v20 = vpop.f32.mrb[7].mxu1 }
 0x167   :  { %v807_v29 = vpop.f32.mrb[0].mxu0 }
 0x168   :  { %v1189_v31 = vadd.f32 %v807_v29, %v726_v27  ;;  %v809_v32 = vpop.f32.mrb[1].mxu0 }
 0x169   :  { %v1192_v33 = vadd.f32 %v809_v32, %v728_v28  ;;  %v811_v34 = vpop.f32.mrb[2].mxu0 }
 0x16a   :  { %v1190_v35 = vadd.f32 %v1189_v31, %v848_v16  ;;  %v812_v36 = vpop.f32.mrb[3].mxu0 }
 0x16b   :  { %v1193_v37 = vadd.f32 %v1192_v33, %v850_v17 }
 0x16c   :  { %v855_v38 = vmax.f32 %v1190_v35, 0.0 }
 0x16d   :  { %v856_v39 = vmax.f32 %v1193_v37, 0.0 }
 0x16e   :  { %v857_v41 = vpack.c.bf16 %v855_v38, %v855_v38 }
 0x16f   :  { %v858_v40 = vpack.c.bf16 %v856_v39, %v856_v39 }
 0x171   :  { %1026 = vmatprep.mubr.bf16.mxu1 %v858_v40 }
 0x172   :  { %1027 = vmatmul.mubr.bf16.vlgmr.msra.gmra.mrb[8].mxu1 %v857_v41 }
 0x245   :  { %v1182_v30 = vpop.f32.mrb[8].mxu1 }
 0x246   :  { %v1183_v42 = vpop.f32.mrb[9].mxu1 }
 0x247   :  { %v1184_v43 = vadd.f32 %v1183_v42, %v1182_v30  ;;  %v1185_v44 = vpop.f32.mrb[10].mxu1 }
 0x248   :  { %v1186_v45 = vpop.f32.mrb[11].mxu1 }
 0x249   :  { %v1029_v25 = vadd.f32 %v1184_v43, %v1149_v19 }
 0x24b   :  { %1034 = vst [vmem:[#allocation5] sm:$0x3] %v1029_v25 }
 0x24c   :  { %1402 = shalt.err (!%p1399_p12)
}
 0x24d   :  { %s1403_s4 = scalar_lea.hbm %s1571_s5, 32 }
 0x24e   :  { %p1404_p13 = scmp.ne.s32.totalorder %s1571_s5, %s1403_s4  ;;  %p1407_p0 = scmp.lt.u32.totalorder %s1403_s4, %s1571_s5 }
 0x250   :  { %p1409_p1 = pnand %p1407_p0, %p1404_p13 }
 0x252   :  { %1412 = shalt.err (!%p1409_p1)
}
 0x253   :  { %1044 = dma.vmem_to_hbm [thread:$0]  %s1042_s17, 32, %s1571_s5, [#allocation4]  }
 0x254   :  { %1415 = dma.done.wait [#allocation4], 32  }
 0x255   :  { %1416 = vsyncadd [#allocation4], 4294967264 }
 0x256   :  { %1048 = vsyncpa [#allocation3], 1 }
 0x257   :  { %1049 = vsyncpa [#allocation4], 1 }

</bundles_post_ra>
